<compile_context>
chip_gen: v7x
topology: tpu7x:2x2x1
jax: 0.10.0
libtpu: 0.0.40
codegen_flags: <defaults>
</compile_context>

<pallas_src>
import numpy as np
import jax
import jax.numpy as jnp
from jax import lax
from jax.experimental import pallas as pl
from jax.experimental.pallas import tpu as pltpu


# --------------------------- fused conv + BN + ReLU + 1x1 + upsample ---------------------------
def make_fused_head(N, H, W, Cin, Cmid, ncls, Ho, Wo, dtype=jnp.float32):
    HW, HoWo, K = H * W, Ho * Wo, 9 * Cin

    def kernel(xc_ref, w1_ref, s_ref, b_ref, w2_ref, b2_ref, rT_ref, o_ref):
        # 3x3 conv as a single (Cmid, 9*Cin) @ (9*Cin, H*W) matmul on the MXU
        acc = jnp.dot(w1_ref[...], xc_ref[0],
                      preferred_element_type=jnp.float32)            # (Cmid, HW)
        # folded BatchNorm (inference running stats) + ReLU
        y = jnp.maximum(acc * s_ref[...] + b_ref[...], 0.0)          # (Cmid, HW)
        # fused align_corners bilinear upsample: (Cmid, HW) @ (HW, Ho*Wo)
        yr = jnp.dot(y, rT_ref[...],
                     preferred_element_type=jnp.float32)             # (Cmid, HoWo)
        # 1x1 conv with bias, lane-dense (ncls, Ho*Wo) output
        out = jnp.dot(w2_ref[...], yr,
                      preferred_element_type=jnp.float32) + b2_ref[...]
        o_ref[0] = out.astype(o_ref.dtype)

    return pl.pallas_call(
        kernel,
        out_shape=jax.ShapeDtypeStruct((N, ncls, HoWo), dtype),
        grid_spec=pltpu.PrefetchScalarGridSpec(
            num_scalar_prefetch=0,
            grid=(N,),
            in_specs=[
                pl.BlockSpec((1, K, HW), lambda n: (n, 0, 0)),       # im2col activations
                pl.BlockSpec((Cmid, K), lambda n: (0, 0)),           # 3x3 weights (Cmid, 9*Cin)
                pl.BlockSpec((Cmid, 1), lambda n: (0, 0)),           # bn scale (column)
                pl.BlockSpec((Cmid, 1), lambda n: (0, 0)),           # bn bias (column)
                pl.BlockSpec((ncls, Cmid), lambda n: (0, 0)),        # 1x1 weight
                pl.BlockSpec((ncls, 1), lambda n: (0, 0)),           # 1x1 bias (column)
                pl.BlockSpec((HW, HoWo), lambda n: (0, 0)),          # kron(Rh,Rw)^T
            ],
            out_specs=pl.BlockSpec((1, ncls, HoWo), lambda n: (n, 0, 0)),
        ),
        compiler_params=pltpu.CompilerParams(dimension_semantics=("parallel",)),
    )


# ----------------------------------------- helpers ---------------------------------------------
def interp_matrix(out_size, in_size):
    """Row-stochastic bilinear interpolation matrix, align_corners=True (numpy)."""
    if out_size == 1:
        coords = np.zeros((1,), np.float64)
    else:
        coords = np.arange(out_size, dtype=np.float64) * (in_size - 1) / (out_size - 1)
    i0 = np.clip(np.floor(coords).astype(np.int64), 0, in_size - 1)
    i1 = np.clip(i0 + 1, 0, in_size - 1)
    frac = (coords - i0).astype(np.float32)
    R = np.zeros((out_size, in_size), np.float32)
    R[np.arange(out_size), i0] += 1.0 - frac
    R[np.arange(out_size), i1] += frac
    return R


def classifier1_forward(x_nchw, params, size):
    """Pallas forward. x_nchw: (N, 128, H, W) float32; size: (Ho, Wo)."""
    w1, gamma, beta, rmean, rvar, w2, b2 = params
    N, Cin, H, W = x_nchw.shape
    Cmid = w1.shape[0]
    ncls = w2.shape[0]
    Ho, Wo = size
    eps = 1e-5

    # fold BatchNorm (inference) into scale/bias  TODO(synk): training-mode batch stats not modeled
    scale = gamma / jnp.sqrt(rvar + eps)
    bias = beta - rmean * scale

    # channel-major im2col (pure layout plumbing; stays NCHW, no large transpose)
    x_pad = jnp.pad(x_nchw, ((0, 0), (0, 0), (1, 1), (1, 1)))
    taps = [x_pad[:, :, dy:dy + H, dx:dx + W] for dy in range(3) for dx in range(3)]
    xcolT = jnp.stack(taps, axis=1).reshape(N, 9 * Cin, H * W)        # (N, 9*Cin, H*W)

    # weights in channel-major matmul form
    w1_k = jnp.transpose(w1, (0, 2, 3, 1)).reshape(Cmid, 9 * Cin)     # (Cmid, 9*Cin), (dy,dx,cin)
    w2_k = w2.reshape(ncls, Cmid)                                     # (ncls, Cmid)
    b2_k = b2.reshape(ncls, 1)

    # fused align_corners bilinear as one (H*W, Ho*Wo) matrix: R = kron(Rh, Rw)
    R = np.kron(interp_matrix(Ho, H), interp_matrix(Wo, W))           # (Ho*Wo, H*W)
    RT = jnp.asarray(R.T, jnp.float32)                                # (H*W, Ho*Wo)

    fused = make_fused_head(N, H, W, Cin, Cmid, ncls, Ho, Wo)
    out = fused(xcolT, w1_k, scale.reshape(Cmid, 1), bias.reshape(Cmid, 1),
                w2_k, b2_k, RT)                                       # (N, ncls, Ho*Wo)
    return out.reshape(N, ncls, Ho, Wo)


def reference_forward(x_nchw, params, size):
    """Pure-JAX reference for validation."""
    w1, gamma, beta, rmean, rvar, w2, b2 = params
    Ho, Wo = size
    H, W = x_nchw.shape[2], x_nchw.shape[3]
    eps = 1e-5
    y = lax.conv_general_dilated(x_nchw, w1, (1, 1), ((1, 1), (1, 1)),
                                 dimension_numbers=("NCHW", "OIHW", "NCHW"))
    scale = gamma / jnp.sqrt(rvar + eps)
    bias = beta - rmean * scale
    y = jnp.maximum(y * scale[None, :, None, None] + bias[None, :, None, None], 0.0)
    z = lax.conv_general_dilated(y, w2, (1, 1), "VALID",
                                 dimension_numbers=("NCHW", "OIHW", "NCHW"))
    z = z + b2[None, :, None, None]
    Rh = jnp.asarray(interp_matrix(Ho, H))
    Rw = jnp.asarray(interp_matrix(Wo, W))
    out = jnp.einsum("oh,nchw->ncow", Rh, z)
    out = jnp.einsum("pw,ncow->ncop", Rw, out)
    return out


# ------------------------------------------- main ----------------------------------------------
if __name__ == "__main__":
    N, Cin, H, W = 2, 128, 8, 8          # module hard-codes 128 input channels
    Cmid, num_classes = 32, 4
    size = (16, 16)

    key = jax.random.PRNGKey(0)
    kx, k1, k2, k3, k4, k5, k6, k7 = jax.random.split(key, 8)
    x = jax.random.normal(kx, (N, Cin, H, W), jnp.float32)
    w1 = jax.random.normal(k1, (Cmid, Cin, 3, 3), jnp.float32) * 0.05
    gamma = 1.0 + 0.1 * jax.random.normal(k2, (Cmid,), jnp.float32)
    beta = 0.1 * jax.random.normal(k3, (Cmid,), jnp.float32)
    rmean = 0.1 * jax.random.normal(k4, (Cmid,), jnp.float32)
    rvar = jax.random.uniform(k5, (Cmid,), jnp.float32, minval=0.5, maxval=1.5)
    w2 = 0.1 * jax.random.normal(k6, (num_classes, Cmid, 1, 1), jnp.float32)
    b2 = 0.1 * jax.random.normal(k7, (num_classes,), jnp.float32)
    params = (w1, gamma, beta, rmean, rvar, w2, b2)

    out = classifier1_forward(x, params, size)
    out = jax.block_until_ready(out)
    assert out.shape == (N, num_classes, size[0], size[1]), out.shape

    ref = reference_forward(x, params, size)
    np.testing.assert_allclose(np.asarray(out), np.asarray(ref), rtol=1e-2, atol=1e-2)
    print("KERNEL_OK")
</pallas_src>

<mosaic_0001>
module attributes {stable_mosaic.version = 11 : i64} {
  func.func @kernel(%arg0: i32, %arg1: memref<1x1152x64xf32, #tpu.memory_space<vmem>>, %arg2: memref<32x1152xf32, #tpu.memory_space<vmem>>, %arg3: memref<32x1xf32, #tpu.memory_space<vmem>>, %arg4: memref<32x1xf32, #tpu.memory_space<vmem>>, %arg5: memref<4x32xf32, #tpu.memory_space<vmem>>, %arg6: memref<4x1xf32, #tpu.memory_space<vmem>>, %arg7: memref<64x256xf32, #tpu.memory_space<vmem>>, %arg8: memref<1x4x256xf32, #tpu.memory_space<vmem>>) attributes {dimension_semantics = [#tpu.dimension_semantics<parallel>], iteration_bounds = array<i64: 2>, scalar_prefetch = 0 : i64, scratch_operands = 0 : i64, tpu.core_type = #tpu.core_type<tc>, window_params = [{transform_indices = @transform_0, window_bounds = array<i64: 1, 1152, 64>}, {pipeline_mode = #tpu.pipeline_mode<synchronous>, transform_indices = @transform_1, window_bounds = array<i64: 32, 1152>}, {pipeline_mode = #tpu.pipeline_mode<synchronous>, transform_indices = @transform_2, window_bounds = array<i64: 32, 1>}, {pipeline_mode = #tpu.pipeline_mode<synchronous>, transform_indices = @transform_3, window_bounds = array<i64: 32, 1>}, {pipeline_mode = #tpu.pipeline_mode<synchronous>, transform_indices = @transform_4, window_bounds = array<i64: 4, 32>}, {pipeline_mode = #tpu.pipeline_mode<synchronous>, transform_indices = @transform_5, window_bounds = array<i64: 4, 1>}, {pipeline_mode = #tpu.pipeline_mode<synchronous>, transform_indices = @transform_6, window_bounds = array<i64: 64, 256>}, {transform_indices = @transform_7, window_bounds = array<i64: 1, 4, 256>}]} {
    %c0 = arith.constant 0 : index
    %c0_0 = arith.constant 0 : index
    %0 = vector.load %arg2[%c0, %c0_0] : memref<32x1152xf32, #tpu.memory_space<vmem>>, vector<32x1152xf32>
    %c0_1 = arith.constant 0 : index
    %c0_2 = arith.constant 0 : index
    %c0_3 = arith.constant 0 : index
    %1 = vector.load %arg1[%c0_1, %c0_2, %c0_3] : memref<1x1152x64xf32, #tpu.memory_space<vmem>>, vector<1x1152x64xf32>
    %2 = vector.shape_cast %1 : vector<1x1152x64xf32> to vector<1152x64xf32>
    %cst = arith.constant dense<0.000000e+00> : vector<32x64xf32>
    %3 = tpu.matmul %0, %2, %cst {dimension_numbers = #tpu.dot_dimension_numbers<[1], [0], [0], [1], [0, 0, 1, 1], [], []>} : vector<32x1152xf32>, vector<1152x64xf32>, vector<32x64xf32> -> vector<32x64xf32>
    %c0_4 = arith.constant 0 : index
    %c0_5 = arith.constant 0 : index
    %4 = vector.load %arg3[%c0_4, %c0_5] : memref<32x1xf32, #tpu.memory_space<vmem>>, vector<32x1xf32>
    %5 = vector.broadcast %4 : vector<32x1xf32> to vector<32x64xf32>
    %6 = arith.mulf %3, %5 : vector<32x64xf32>
    %c0_6 = arith.constant 0 : index
    %c0_7 = arith.constant 0 : index
    %7 = vector.load %arg4[%c0_6, %c0_7] : memref<32x1xf32, #tpu.memory_space<vmem>>, vector<32x1xf32>
    %8 = vector.broadcast %7 : vector<32x1xf32> to vector<32x64xf32>
    %9 = arith.addf %6, %8 : vector<32x64xf32>
    %cst_8 = arith.constant 0.000000e+00 : f32
    %10 = vector.broadcast %cst_8 : f32 to vector<32x64xf32>
    %11 = arith.maximumf %9, %10 : vector<32x64xf32>
    %c0_9 = arith.constant 0 : index
    %c0_10 = arith.constant 0 : index
    %12 = vector.load %arg7[%c0_9, %c0_10] : memref<64x256xf32, #tpu.memory_space<vmem>>, vector<64x256xf32>
    %cst_11 = arith.constant dense<0.000000e+00> : vector<32x256xf32>
    %13 = tpu.matmul %11, %12, %cst_11 {dimension_numbers = #tpu.dot_dimension_numbers<[1], [0], [0], [1], [0, 0, 1, 1], [], []>} : vector<32x64xf32>, vector<64x256xf32>, vector<32x256xf32> -> vector<32x256xf32>
    %c0_12 = arith.constant 0 : index
    %c0_13 = arith.constant 0 : index
    %14 = vector.load %arg5[%c0_12, %c0_13] : memref<4x32xf32, #tpu.memory_space<vmem>>, vector<4x32xf32>
    %cst_14 = arith.constant dense<0.000000e+00> : vector<4x256xf32>
    %15 = tpu.matmul %14, %13, %cst_14 {dimension_numbers = #tpu.dot_dimension_numbers<[1], [0], [0], [1], [0, 0, 1, 1], [], []>} : vector<4x32xf32>, vector<32x256xf32>, vector<4x256xf32> -> vector<4x256xf32>
    %c0_15 = arith.constant 0 : index
    %c0_16 = arith.constant 0 : index
    %16 = vector.load %arg6[%c0_15, %c0_16] : memref<4x1xf32, #tpu.memory_space<vmem>>, vector<4x1xf32>
    %17 = vector.broadcast %16 : vector<4x1xf32> to vector<4x256xf32>
    %18 = arith.addf %15, %17 : vector<4x256xf32>
    %c0_17 = arith.constant 0 : index
    %c0_18 = arith.constant 0 : index
    %c0_19 = arith.constant 0 : index
    %19 = vector.load %arg8[%c0_17, %c0_18, %c0_19] : memref<1x4x256xf32, #tpu.memory_space<vmem>>, vector<1x4x256xf32>
    %20 = vector.shape_cast %19 : vector<1x4x256xf32> to vector<4x256xf32>
    %21 = vector.shape_cast %18 : vector<4x256xf32> to vector<1x4x256xf32>
    tpu.vector_store %arg8[%c0_17, %c0_18, %c0_19], %21 {strides = array<i32>} : memref<1x4x256xf32, #tpu.memory_space<vmem>>, vector<1x4x256xf32>,
    return
  }
  func.func @transform_0(%arg0: i32) -> (i32, i32, i32) {
    %c0_i32 = arith.constant 0 : i32
    %c0_i32_0 = arith.constant 0 : i32
    %c0_i32_1 = arith.constant 0 : i32
    return %arg0, %c0_i32, %c0_i32_0 : i32, i32, i32
  }
  func.func @transform_1(%arg0: i32) -> (i32, i32) {
    %c0_i32 = arith.constant 0 : i32
    %c0_i32_0 = arith.constant 0 : i32
    %c0_i32_1 = arith.constant 0 : i32
    return %c0_i32, %c0_i32_0 : i32, i32
  }
  func.func @transform_2(%arg0: i32) -> (i32, i32) {
    %c0_i32 = arith.constant 0 : i32
    %c0_i32_0 = arith.constant 0 : i32
    %c0_i32_1 = arith.constant 0 : i32
    return %c0_i32, %c0_i32_0 : i32, i32
  }
  func.func @transform_3(%arg0: i32) -> (i32, i32) {
    %c0_i32 = arith.constant 0 : i32
    %c0_i32_0 = arith.constant 0 : i32
    %c0_i32_1 = arith.constant 0 : i32
    return %c0_i32, %c0_i32_0 : i32, i32
  }
  func.func @transform_4(%arg0: i32) -> (i32, i32) {
    %c0_i32 = arith.constant 0 : i32
    %c0_i32_0 = arith.constant 0 : i32
    %c0_i32_1 = arith.constant 0 : i32
    return %c0_i32, %c0_i32_0 : i32, i32
  }
  func.func @transform_5(%arg0: i32) -> (i32, i32) {
    %c0_i32 = arith.constant 0 : i32
    %c0_i32_0 = arith.constant 0 : i32
    %c0_i32_1 = arith.constant 0 : i32
    return %c0_i32, %c0_i32_0 : i32, i32
  }
  func.func @transform_6(%arg0: i32) -> (i32, i32) {
    %c0_i32 = arith.constant 0 : i32
    %c0_i32_0 = arith.constant 0 : i32
    %c0_i32_1 = arith.constant 0 : i32
    return %c0_i32, %c0_i32_0 : i32, i32
  }
  func.func @transform_7(%arg0: i32) -> (i32, i32, i32) {
    %c0_i32 = arith.constant 0 : i32
    %c0_i32_0 = arith.constant 0 : i32
    %c0_i32_1 = arith.constant 0 : i32
    return %arg0, %c0_i32, %c0_i32_0 : i32, i32, i32
  }
}

</mosaic_0001>

<bundles_post_ra>
// kernel: tpu_custom_call.1
= control target key start
LH: loop header
LB: loop body
LE: loop exit
PB: predicated region body
PF: predicated region fallthrough
CT: control target
= control target key end

     0   :  { %12 = vsyncpa [#allocation3], 0  ;;  %s2248_s0 = inlined_call_operand.vmem [shape: f32[2,1152,64], index: 0, kind: input, shape index: {}]   ;;  %s2249_s1 = inlined_call_operand.vmem [shape: f32[32,1152], index: 1, kind: input, shape index: {}]   ;;  %s2250_s2 = inlined_call_operand.vmem [shape: f32[32,1], index: 2, kind: input, shape index: {}]   ;;  %s2251_s3 = inlined_call_operand.vmem [shape: f32[32,1], index: 3, kind: input, shape index: {}]   ;;  %s2252_s4 = inlined_call_operand.vmem [shape: f32[4,32], index: 4, kind: input, shape index: {}]   ;;  %s2253_s5 = inlined_call_operand.vmem [shape: f32[4,1], index: 5, kind: input, shape index: {}]   ;;  %s2254_s6 = inlined_call_operand.vmem [shape: f32[64,256], index: 6, kind: input, shape index: {}]   ;;  %s2255_s7 = inlined_call_operand.hbm [shape: f32[2,4,256], index: 7, kind: output, shape index: {}]  }
   0x1   :  { %14 = vsyncpa [#allocation3 + $0x1], 0  ;;  %s1807_s24 = smov 0   ;;  %s1809_s25 = smov 0  }
   0x2   :  { %s1811_s26 = smov 0   ;;  %s1813_s27 = smov 0  }
   0x3 LB: > { %s1828_s28 = sadd.s32 4294967295, %s1762_s27   ;;  %s1221_s29 = sadd.s32 4294967294, %s1762_s27   ;;  %s1762_s27 = sphi %s1813_s27, %s2261_s27   ;;  %s1758_s26 = sphi %s1811_s26, %s2260_s26   ;;  %s1754_s25 = sphi %s1809_s25, %s2259_s25   ;;  %s1750_s24 = sphi %s1807_s24, %s2258_s24  }
   0x4   : > { %s1832_s30 = sadd.s32 1, %s1762_s27   ;;  %s179_s8 = sadd.s32 1, %s1758_s26 }
   0x5   : > { %s176_s9 = ssub.s32 %s1762_s27, %s1832_s30  ;;  %p189_p0 = scmp.ne.s32.totalorder %s1758_s26, %s1754_s25 }
   0x6   : > { %p177_p1 = scmp.eq.s32.totalorder %s176_s9, 0  ;;  %p190_p2 = scmp.eq.s32.totalorder %s1828_s28, 1 }
   0x7   : > { %p195_p3 = scmp.ne.s32.totalorder %s1754_s25, %s1750_s24  ;;  %p196_p4 = scmp.eq.s32.totalorder %s1221_s29, 1 }
   0x8   : > { %s1843_s10 = scalar_select %p177_p1, %s1758_s26, %s179_s8  }
   0x9   : > { %p1845_p5 = por %p190_p2, %p189_p0  ;;  %p1849_p6 = por %p196_p4, %p195_p3 }
   0xa   : > { %p1224_p7 = scmp.ge.s32.totalorder %s1762_s27, 1  ;;  %p240_p8 = scmp.lt.s32.totalorder %s1762_s27, 3 }
   0xc   : > { %p241_p9 = pnand %p1224_p7, %p240_p8 }
   0xd   : > { %p272_p10 = scmp.lt.s32.totalorder (!%p241_p9), %s1828_s28, 1  ;;  %v278_v0 = vld [vmem:[%s2249_s1 + $0x8] sm:$0xff] (!%p241_p9)  ;;  %v280_v1 = vld [vmem:[%s2249_s1 + $0x18] sm:$0xff] (!%p241_p9)  ;;  %v1764_v2 = vmov (!%p241_p9), 0   ;;  %vm958_vm0 = vcmask (!%p241_p9), 523264   ;;  %vm1067_vm1 = vcmask (!%p241_p9), 261120  }
   0xe   : > { %244 = sbr.rel (%p241_p9) target bundleno = 809 (0x329), region = 48  ;;  %521 = vmatprep.mubr.f32.mxu0 (!%p241_p9), %v278_v0  ;;  %606 = vmatprep.mubr.f32.mxu1 (!%p241_p9), %v280_v1  ;;  %s269_s22 = sand.u32 (!%p241_p9), 1, %s1754_s25  }
   0xf   : > { %1698 = vset.pattern.permute.xlu0 (!%p241_p9), %v1764_v2  ;;  %1699 = vset.pattern.permute.xlu1 (!%p241_p9), %v1764_v2  ;;  %s1225_s23 = sshll.u32 (!%p241_p9), %s269_s22, 3  ;;  %s1237_s29 = sshll.u32 (!%p241_p9), %s1828_s28, 7 }
  0x10   : > { %s271_s8 = scalar_lea.vmem (!%p241_p9), [#allocation2], %s1225_s23  ;;  %s2206_s15 = scalar_lea.hbm (!%p241_p9), %s2255_s7, %s1237_s29 }
  0x11   : > { %s1162_s9 = sshll.u32 (!%p241_p9), %s271_s8, 4  ;;  %s2208_s9 = int_to_ptr.vmem [resolvable:$true] %s1162_s9 }
  0x12   : > { %s1700_s16 = scalar_lea.vmem (!%p241_p9), %s2208_s9, 128 }
  0x13   : > { %p1701_p11 = scmp.ne.s32.totalorder (!%p241_p9), %s2208_s9, %s1700_s16 }
  0x15   : > { %s273_s17 = scalar_select %p272_p10, %s1828_s28, 1 }
  0x16   : > { %p1702_p12 = pnand %p1701_p11, %p1845_p5  ;;  %s1766_s28 = smov [#allocation2]  }
  0x17   : > { %s1656_s18 = smul.u32 1152, %s273_s17  ;;  %s1704_s17 = sshll.u32 %s1766_s28, 4  ;;  %s1705_s17 = int_to_ptr.vmem [resolvable:$false] %s1704_s17 }
  0x18   : > { %p1703_p13 = pneg %p1702_p12  ;;  %p1707_p0 = scmp.lt.s32.totalorder %s2208_s9, %s1705_s17 }
  0x19   : > { %s1866_s21 = scalar_lea.vmem %s2248_s0, %s1656_s18  ;;  %s1706_s18 = scalar_lea.vmem %s1705_s17, 256 }
  0x1a   : > { %v329_v3 = vld [vmem:[%s1866_s21 + $0x80] sm:$0xff]  ;;  %v330_v4 = vld [vmem:[%s1866_s21 + $0x88] sm:$0xff]  ;;  %v331_v14 = vld [vmem:[%s1866_s21 + $0x90] sm:$0xff]  ;;  %p1708_p1 = scmp.lt.s32.totalorder %s1706_s18, %s1700_s16 }
  0x1b   : > { %v361_v5 = vld [vmem:[%s1866_s21 + $0x180] sm:$0xff]  ;;  %v1472_v6 = vpack.c.bf16 %v330_v4, %v329_v3  ;;  %v362_v7 = vld [vmem:[%s1866_s21 + $0x188] sm:$0xff]  ;;  %v332_v16 = vld [vmem:[%s1866_s21 + $0x98] sm:$0xff] }
  0x1c   : > { %v313_v8 = vld [vmem:[%s1866_s21] sm:$0xff]  ;;  %v314_v9 = vld [vmem:[%s1866_s21 + $0x8] sm:$0xff]  ;;  %v1504_v10 = vpack.c.bf16 %v362_v7, %v361_v5  ;;  %v363_v17 = vld [vmem:[%s1866_s21 + $0x190] sm:$0xff]  ;;  %v1476_v19 = vpack.c.bf16 %v332_v16, %v331_v14  ;;  %p1709_p2 = por %p1708_p1, %p1707_p0 }
  0x1d   : > { %v1474_v11 = vpack.c.bf16 %v314_v9, %v313_v8  ;;  %v345_v12 = vld [vmem:[%s1866_s21 + $0x100] sm:$0xff]  ;;  %v346_v13 = vld [vmem:[%s1866_s21 + $0x108] sm:$0xff]  ;;  %1473 = vmatprep.subr.bf16.mxu0 %v1472_v6  ;;  %v364_v18 = vld [vmem:[%s1866_s21 + $0x198] sm:$0xff] }
  0x1e   : > { %v1506_v15 = vpack.c.bf16 %v346_v13, %v345_v12  ;;  %1505 = vmatprep.subr.bf16.mxu1 %v1504_v10  ;;  %v1508_v20 = vpack.c.bf16 %v364_v18, %v363_v17  ;;  %v315_v21 = vld [vmem:[%s1866_s21 + $0x10] sm:$0xff]  ;;  %v316_v22 = vld [vmem:[%s1866_s21 + $0x18] sm:$0xff]  ;;  %v333_v26 = vld [vmem:[%s1866_s21 + $0xa0] sm:$0xff]  ;;  %p1710_p3 = pnand %p1709_p2, %p1703_p13 }
  0x1f   : > { %1475 = vmatpush3.bf16.msra.mxu0 %v1474_v11  ;;  %v347_v23 = vld [vmem:[%s1866_s21 + $0x110] sm:$0xff]  ;;  %v1478_v24 = vpack.c.bf16 %v316_v22, %v315_v21  ;;  %v348_v25 = vld [vmem:[%s1866_s21 + $0x118] sm:$0xff]  ;;  %v334_v27 = vld [vmem:[%s1866_s21 + $0xa8] sm:$0xff] }
  0x20   : > { %1507 = vmatpush3.bf16.msra.mxu1 %v1506_v15  ;;  %1477 = vmatprep.subr.bf16.mxu0 %v1476_v19  ;;  %v1510_v28 = vpack.c.bf16 %v348_v25, %v347_v23  ;;  %v1480_v29 = vpack.c.bf16 %v334_v27, %v333_v26  ;;  %v365_v30 = vld [vmem:[%s1866_s21 + $0x1a0] sm:$0xff]  ;;  %v366_v31 = vld [vmem:[%s1866_s21 + $0x1a8] sm:$0xff]  ;;  %v335_v38 = vld [vmem:[%s1866_s21 + $0xb0] sm:$0xff] }
  0x21   : > { %1509 = vmatprep.subr.bf16.mxu1 %v1508_v20  ;;  %v317_v32 = vld [vmem:[%s1866_s21 + $0x20] sm:$0xff]  ;;  %v1512_v33 = vpack.c.bf16 %v366_v31, %v365_v30  ;;  %v318_v34 = vld [vmem:[%s1866_s21 + $0x28] sm:$0xff]  ;;  %v336_v39 = vld [vmem:[%s1866_s21 + $0xb8] sm:$0xff] }
  0x22   : > { %v349_v35 = vld [vmem:[%s1866_s21 + $0x120] sm:$0xff]  ;;  %v350_v36 = vld [vmem:[%s1866_s21 + $0x128] sm:$0xff]  ;;  %v1482_v37 = vpack.c.bf16 %v318_v34, %v317_v32  ;;  %v367_v40 = vld [vmem:[%s1866_s21 + $0x1b0] sm:$0xff]  ;;  %v1484_v42 = vpack.c.bf16 %v336_v39, %v335_v38 }
  0x23   : > { %1479 = vmatpush3.bf16.msra.mxu0 %v1478_v24  ;;  %v1514_v41 = vpack.c.bf16 %v350_v36, %v349_v35  ;;  %v368_v43 = vld [vmem:[%s1866_s21 + $0x1b8] sm:$0xff]  ;;  %v319_v44 = vld [vmem:[%s1866_s21 + $0x30] sm:$0xff]  ;;  %v337_v49 = vld [vmem:[%s1866_s21 + $0xc0] sm:$0xff] }
  0x24   : > { %1511 = vmatpush3.bf16.msra.mxu1 %v1510_v28  ;;  %1481 = vmatprep.subr.bf16.mxu0 %v1480_v29  ;;  %v320_v45 = vld [vmem:[%s1866_s21 + $0x38] sm:$0xff]  ;;  %v1516_v46 = vpack.c.bf16 %v368_v43, %v367_v40  ;;  %v351_v47 = vld [vmem:[%s1866_s21 + $0x130] sm:$0xff]  ;;  %v338_v50 = vld [vmem:[%s1866_s21 + $0xc8] sm:$0xff] }
  0x25   : > { %1513 = vmatprep.subr.bf16.mxu1 %v1512_v33  ;;  %v352_v48 = vld [vmem:[%s1866_s21 + $0x138] sm:$0xff]  ;;  %v369_v51 = vld [vmem:[%s1866_s21 + $0x1c0] sm:$0xff]  ;;  %v370_v52 = vld [vmem:[%s1866_s21 + $0x1c8] sm:$0xff]  ;;  %v1486_v53 = vpack.c.bf16 %v320_v45, %v319_v44  ;;  %v1488_v55 = vpack.c.bf16 %v338_v50, %v337_v49 }
  0x26   : > { %v1518_v54 = vpack.c.bf16 %v352_v48, %v351_v47  ;;  %v321_v56 = vld [vmem:[%s1866_s21 + $0x40] sm:$0xff]  ;;  %v322_v57 = vld [vmem:[%s1866_s21 + $0x48] sm:$0xff]  ;;  %v1520_v59 = vpack.c.bf16 %v370_v52, %v369_v51  ;;  %v339_v61 = vld [vmem:[%s1866_s21 + $0xd0] sm:$0xff] }
  0x27   : > { %1483 = vmatpush3.bf16.msra.mxu0 %v1482_v37  ;;  %v353_v58 = vld [vmem:[%s1866_s21 + $0x140] sm:$0xff]  ;;  %v354_v60 = vld [vmem:[%s1866_s21 + $0x148] sm:$0xff]  ;;  %v340_v62 = vld [vmem:[%s1866_s21 + $0xd8] sm:$0xff]  ;;  %v1490_v1 = vpack.c.bf16 %v322_v57, %v321_v56 }
  0x28   : > { %1515 = vmatpush3.bf16.msra.mxu1 %v1514_v41  ;;  %1485 = vmatprep.subr.bf16.mxu0 %v1484_v42  ;;  %v371_v63 = vld [vmem:[%s1866_s21 + $0x1d0] sm:$0xff]  ;;  %v372_v0 = vld [vmem:[%s1866_s21 + $0x1d8] sm:$0xff]  ;;  %v1522_v2 = vpack.c.bf16 %v354_v60, %v353_v58  ;;  %v1492_v3 = vpack.c.bf16 %v340_v62, %v339_v61  ;;  %v341_v9 = vld [vmem:[%s1866_s21 + $0xe0] sm:$0xff] }
  0x29   : > { %1517 = vmatprep.subr.bf16.mxu1 %v1516_v46  ;;  %v323_v4 = vld [vmem:[%s1866_s21 + $0x50] sm:$0xff]  ;;  %v324_v5 = vld [vmem:[%s1866_s21 + $0x58] sm:$0xff]  ;;  %v1524_v7 = vpack.c.bf16 %v372_v0, %v371_v63  ;;  %v342_v10 = vld [vmem:[%s1866_s21 + $0xe8] sm:$0xff] }
  0x2a   : > { %v355_v6 = vld [vmem:[%s1866_s21 + $0x150] sm:$0xff]  ;;  %v356_v8 = vld [vmem:[%s1866_s21 + $0x158] sm:$0xff]  ;;  %v373_v11 = vld [vmem:[%s1866_s21 + $0x1e0] sm:$0xff]  ;;  %v1494_v13 = vpack.c.bf16 %v324_v5, %v323_v4  ;;  %v1496_v15 = vpack.c.bf16 %v342_v10, %v341_v9 }
  0x2b   : > { %1487 = vmatpush3.bf16.msra.mxu0 %v1486_v53  ;;  %v374_v12 = vld [vmem:[%s1866_s21 + $0x1e8] sm:$0xff]  ;;  %v1526_v14 = vpack.c.bf16 %v356_v8, %v355_v6  ;;  %v325_v16 = vld [vmem:[%s1866_s21 + $0x60] sm:$0xff]  ;;  %v343_v21 = vld [vmem:[%s1866_s21 + $0xf0] sm:$0xff] }
  0x2c   : > { %1519 = vmatpush3.bf16.msra.mxu1 %v1518_v54  ;;  %1489 = vmatprep.subr.bf16.mxu0 %v1488_v55  ;;  %v326_v17 = vld [vmem:[%s1866_s21 + $0x68] sm:$0xff]  ;;  %v357_v18 = vld [vmem:[%s1866_s21 + $0x160] sm:$0xff]  ;;  %v1528_v19 = vpack.c.bf16 %v374_v12, %v373_v11  ;;  %v344_v22 = vld [vmem:[%s1866_s21 + $0xf8] sm:$0xff] }
  0x2d   : > { %1521 = vmatprep.subr.bf16.mxu1 %v1520_v59  ;;  %v358_v20 = vld [vmem:[%s1866_s21 + $0x168] sm:$0xff]  ;;  %v375_v23 = vld [vmem:[%s1866_s21 + $0x1f0] sm:$0xff]  ;;  %v376_v24 = vld [vmem:[%s1866_s21 + $0x1f8] sm:$0xff]  ;;  %v1498_v25 = vpack.c.bf16 %v326_v17, %v325_v16  ;;  %v1500_v27 = vpack.c.bf16 %v344_v22, %v343_v21 }
  0x2e   : > { %v1530_v26 = vpack.c.bf16 %v358_v20, %v357_v18  ;;  %v327_v28 = vld [vmem:[%s1866_s21 + $0x70] sm:$0xff]  ;;  %v328_v29 = vld [vmem:[%s1866_s21 + $0x78] sm:$0xff]  ;;  %v1532_v31 = vpack.c.bf16 %v376_v24, %v375_v23  ;;  %v393_v33 = vld [vmem:[%s1866_s21 + $0x280] sm:$0xff] }
  0x2f   : > { %1491 = vmatpush3.bf16.msra.mxu0 %v1490_v1  ;;  %v359_v30 = vld [vmem:[%s1866_s21 + $0x170] sm:$0xff]  ;;  %v360_v32 = vld [vmem:[%s1866_s21 + $0x178] sm:$0xff]  ;;  %v394_v34 = vld [vmem:[%s1866_s21 + $0x288] sm:$0xff]  ;;  %v1502_v37 = vpack.c.bf16 %v328_v29, %v327_v28 }
  0x30   : > { %1523 = vmatpush3.bf16.msra.mxu1 %v1522_v2  ;;  %1493 = vmatprep.subr.bf16.mxu0 %v1492_v3  ;;  %v425_v35 = vld [vmem:[%s1866_s21 + $0x380] sm:$0xff]  ;;  %v426_v36 = vld [vmem:[%s1866_s21 + $0x388] sm:$0xff]  ;;  %v1534_v38 = vpack.c.bf16 %v360_v32, %v359_v30  ;;  %v1536_v39 = vpack.c.bf16 %v394_v34, %v393_v33  ;;  %v395_v45 = vld [vmem:[%s1866_s21 + $0x290] sm:$0xff] }
  0x31   : > { %1525 = vmatprep.subr.bf16.mxu1 %v1524_v7  ;;  %v377_v40 = vld [vmem:[%s1866_s21 + $0x200] sm:$0xff]  ;;  %v378_v41 = vld [vmem:[%s1866_s21 + $0x208] sm:$0xff]  ;;  %v1568_v43 = vpack.c.bf16 %v426_v36, %v425_v35  ;;  %v396_v46 = vld [vmem:[%s1866_s21 + $0x298] sm:$0xff] }
  0x32   : > { %v409_v42 = vld [vmem:[%s1866_s21 + $0x300] sm:$0xff]  ;;  %v410_v44 = vld [vmem:[%s1866_s21 + $0x308] sm:$0xff]  ;;  %v427_v47 = vld [vmem:[%s1866_s21 + $0x390] sm:$0xff]  ;;  %v1538_v51 = vpack.c.bf16 %v378_v41, %v377_v40  ;;  %v1540_v53 = vpack.c.bf16 %v396_v46, %v395_v45 }
  0x33   : > { %1495 = vmatpush3.bf16.msra.mxu0 %v1494_v13  ;;  %v428_v48 = vld [vmem:[%s1866_s21 + $0x398] sm:$0xff]  ;;  %v277_v49 = vld [vmem:[%s2249_s1] sm:$0xff]  ;;  %v279_v50 = vld [vmem:[%s2249_s1 + $0x10] sm:$0xff]  ;;  %v1570_v52 = vpack.c.bf16 %v410_v44, %v409_v42 }
  0x34   : > { %1527 = vmatpush3.bf16.msra.mxu1 %v1526_v14  ;;  %1497 = vmatprep.subr.bf16.mxu0 %v1496_v15  ;;  %v379_v54 = vld [vmem:[%s1866_s21 + $0x210] sm:$0xff]  ;;  %v380_v55 = vld [vmem:[%s1866_s21 + $0x218] sm:$0xff]  ;;  %v1572_v57 = vpack.c.bf16 %v428_v48, %v427_v47  ;;  %v397_v59 = vld [vmem:[%s1866_s21 + $0x2a0] sm:$0xff] }
  0x35   : > { %1529 = vmatprep.subr.bf16.mxu1 %v1528_v19  ;;  %v411_v56 = vld [vmem:[%s1866_s21 + $0x310] sm:$0xff]  ;;  %v412_v58 = vld [vmem:[%s1866_s21 + $0x318] sm:$0xff]  ;;  %v398_v60 = vld [vmem:[%s1866_s21 + $0x2a8] sm:$0xff]  ;;  %v1542_v0 = vpack.c.bf16 %v380_v55, %v379_v54 }
  0x36   : > { %v429_v61 = vld [vmem:[%s1866_s21 + $0x3a0] sm:$0xff]  ;;  %v430_v62 = vld [vmem:[%s1866_s21 + $0x3a8] sm:$0xff]  ;;  %v287_v63 = vld [vmem:[%s2249_s1 + $0x50] sm:$0xff]  ;;  %v1574_v4 = vpack.c.bf16 %v412_v58, %v411_v56  ;;  %v1544_v5 = vpack.c.bf16 %v398_v60, %v397_v59 }
  0x37   : > { %1499 = vmatpush3.bf16.msra.mxu0 %v1498_v25  ;;  %v289_v1 = vld [vmem:[%s2249_s1 + $0x60] sm:$0xff]  ;;  %v286_v2 = vld [vmem:[%s2249_s1 + $0x48] sm:$0xff]  ;;  %v288_v3 = vld [vmem:[%s2249_s1 + $0x58] sm:$0xff]  ;;  %v1576_v9 = vpack.c.bf16 %v430_v62, %v429_v61 }
  0x38   : > { %1531 = vmatpush3.bf16.msra.mxu1 %v1530_v26  ;;  %1501 = vmatprep.subr.bf16.mxu0 %v1500_v27  ;;  %v381_v6 = vld [vmem:[%s1866_s21 + $0x220] sm:$0xff]  ;;  %v382_v7 = vld [vmem:[%s1866_s21 + $0x228] sm:$0xff]  ;;  %v399_v11 = vld [vmem:[%s1866_s21 + $0x2b0] sm:$0xff] }
  0x39   : > { %1533 = vmatprep.subr.bf16.mxu1 %v1532_v31  ;;  %v413_v8 = vld [vmem:[%s1866_s21 + $0x320] sm:$0xff]  ;;  %v414_v10 = vld [vmem:[%s1866_s21 + $0x328] sm:$0xff]  ;;  %v400_v12 = vld [vmem:[%s1866_s21 + $0x2b8] sm:$0xff]  ;;  %v1546_v16 = vpack.c.bf16 %v382_v7, %v381_v6 }
  0x3a   : > { %v431_v13 = vld [vmem:[%s1866_s21 + $0x3b0] sm:$0xff]  ;;  %v432_v14 = vld [vmem:[%s1866_s21 + $0x3b8] sm:$0xff]  ;;  %v298_v17 = vld [vmem:[%s2249_s1 + $0xa8] sm:$0xff]  ;;  %v1578_v20 = vpack.c.bf16 %v414_v10, %v413_v8  ;;  %v1548_v21 = vpack.c.bf16 %v400_v12, %v399_v11 }
  0x3b   : > { %1503 = vmatpush3.bf16.msra.mxu0 %v1502_v37  ;;  %v296_v15 = vld [vmem:[%s2249_s1 + $0x98] sm:$0xff]  ;;  %v295_v18 = vld [vmem:[%s2249_s1 + $0x90] sm:$0xff]  ;;  %v297_v19 = vld [vmem:[%s2249_s1 + $0xa0] sm:$0xff]  ;;  %v1580_v25 = vpack.c.bf16 %v432_v14, %v431_v13 }
  0x3c   : > { %1535 = vmatpush3.bf16.msra.mxu1 %v1534_v38  ;;  %1537 = vmatprep.subr.bf16.mxu0 %v1536_v39  ;;  %v383_v22 = vld [vmem:[%s1866_s21 + $0x230] sm:$0xff]  ;;  %v384_v23 = vld [vmem:[%s1866_s21 + $0x238] sm:$0xff]  ;;  %v401_v27 = vld [vmem:[%s1866_s21 + $0x2c0] sm:$0xff] }
  0x3d   : > { %1569 = vmatprep.subr.bf16.mxu1 %v1568_v43  ;;  %v415_v24 = vld [vmem:[%s1866_s21 + $0x330] sm:$0xff]  ;;  %v416_v26 = vld [vmem:[%s1866_s21 + $0x338] sm:$0xff]  ;;  %v402_v28 = vld [vmem:[%s1866_s21 + $0x2c8] sm:$0xff]  ;;  %v1550_v32 = vpack.c.bf16 %v384_v23, %v383_v22 }
  0x3e   : > { %522 = vmatmul.mubr.f32.vlgmr.msra.gmra.mrb[0].mxu0 %v277_v49  ;;  %v433_v29 = vld [vmem:[%s1866_s21 + $0x3c0] sm:$0xff]  ;;  %v434_v30 = vld [vmem:[%s1866_s21 + $0x3c8] sm:$0xff]  ;;  %v307_v33 = vld [vmem:[%s2249_s1 + $0xf0] sm:$0xff]  ;;  %v1582_v36 = vpack.c.bf16 %v416_v26, %v415_v24  ;;  %v1552_v37 = vpack.c.bf16 %v402_v28, %v401_v27 }
  0x3f   : > { %607 = vmatmul.mubr.f32.vlgmr.msra.gmra.mrb[0].mxu1 %v279_v50  ;;  %1539 = vmatpush3.bf16.msra.mxu0 %v1538_v51  ;;  %v305_v31 = vld [vmem:[%s2249_s1 + $0xe0] sm:$0xff]  ;;  %v304_v34 = vld [vmem:[%s2249_s1 + $0xd8] sm:$0xff]  ;;  %v306_v35 = vld [vmem:[%s2249_s1 + $0xe8] sm:$0xff]  ;;  %v1584_v41 = vpack.c.bf16 %v434_v30, %v433_v29 }
  0x40   : > { %1571 = vmatpush3.bf16.msra.mxu1 %v1570_v52  ;;  %1541 = vmatprep.subr.bf16.mxu0 %v1540_v53  ;;  %v385_v38 = vld [vmem:[%s1866_s21 + $0x240] sm:$0xff]  ;;  %v386_v39 = vld [vmem:[%s1866_s21 + $0x248] sm:$0xff]  ;;  %v403_v43 = vld [vmem:[%s1866_s21 + $0x2d0] sm:$0xff] }
  0x41   : > { %1573 = vmatprep.subr.bf16.mxu1 %v1572_v57  ;;  %526 = vmatprep.mubr.f32.mxu0 %v287_v63  ;;  %v417_v40 = vld [vmem:[%s1866_s21 + $0x340] sm:$0xff]  ;;  %v418_v42 = vld [vmem:[%s1866_s21 + $0x348] sm:$0xff]  ;;  %v404_v44 = vld [vmem:[%s1866_s21 + $0x2d8] sm:$0xff]  ;;  %v1554_v48 = vpack.c.bf16 %v386_v39, %v385_v38 }
  0x42   : > { %611 = vmatprep.mubr.f32.mxu1 %v289_v1  ;;  %527 = vmatmul.mubr.f32.gmra.mrb[2].mxu0 %v286_v2  ;;  %v435_v45 = vld [vmem:[%s1866_s21 + $0x3d0] sm:$0xff]  ;;  %v436_v46 = vld [vmem:[%s1866_s21 + $0x3d8] sm:$0xff]  ;;  %v282_v47 = vld [vmem:[%s2249_s1 + $0x28] sm:$0xff]  ;;  %v1586_v50 = vpack.c.bf16 %v418_v42, %v417_v40  ;;  %v1556_v51 = vpack.c.bf16 %v404_v44, %v403_v43 }
  0x43   : > { %1543 = vmatpush3.bf16.msra.mxu0 %v1542_v0  ;;  %612 = vmatmul.mubr.f32.gmra.mrb[2].mxu1 %v288_v3  ;;  %v284_v49 = vld [vmem:[%s2249_s1 + $0x38] sm:$0xff]  ;;  %v387_v52 = vld [vmem:[%s1866_s21 + $0x250] sm:$0xff]  ;;  %v1588_v55 = vpack.c.bf16 %v436_v46, %v435_v45  ;;  %v405_v57 = vld [vmem:[%s1866_s21 + $0x2e0] sm:$0xff] }
  0x44   : > { %1575 = vmatpush3.bf16.msra.mxu1 %v1574_v4  ;;  %1545 = vmatprep.subr.bf16.mxu0 %v1544_v5  ;;  %v388_v53 = vld [vmem:[%s1866_s21 + $0x258] sm:$0xff]  ;;  %v419_v54 = vld [vmem:[%s1866_s21 + $0x350] sm:$0xff]  ;;  %v406_v58 = vld [vmem:[%s1866_s21 + $0x2e8] sm:$0xff] }
  0x45   : > { %1577 = vmatprep.subr.bf16.mxu1 %v1576_v9  ;;  %531 = vmatprep.mubr.f32.mxu0 %v296_v15  ;;  %v420_v56 = vld [vmem:[%s1866_s21 + $0x358] sm:$0xff]  ;;  %v437_v59 = vld [vmem:[%s1866_s21 + $0x3e0] sm:$0xff]  ;;  %v438_v60 = vld [vmem:[%s1866_s21 + $0x3e8] sm:$0xff]  ;;  %v1558_v61 = vpack.c.bf16 %v388_v53, %v387_v52  ;;  %v1560_v1 = vpack.c.bf16 %v406_v58, %v405_v57 }
  0x46   : > { %616 = vmatprep.mubr.f32.mxu1 %v298_v17  ;;  %532 = vmatmul.mubr.f32.gmra.mrb[4].mxu0 %v295_v18  ;;  %v389_v62 = vld [vmem:[%s1866_s21 + $0x260] sm:$0xff]  ;;  %v390_v63 = vld [vmem:[%s1866_s21 + $0x268] sm:$0xff]  ;;  %v1590_v0 = vpack.c.bf16 %v420_v56, %v419_v54  ;;  %v1592_v5 = vpack.c.bf16 %v438_v60, %v437_v59  ;;  %v407_v7 = vld [vmem:[%s1866_s21 + $0x2f0] sm:$0xff] }
  0x47   : > { %1547 = vmatpush3.bf16.msra.mxu0 %v1546_v16  ;;  %617 = vmatmul.mubr.f32.gmra.mrb[4].mxu1 %v297_v19  ;;  %v421_v2 = vld [vmem:[%s1866_s21 + $0x360] sm:$0xff]  ;;  %v883_v4 = vld [vmem:[%s2250_s2 + $0x8] sm:$0xff]  ;;  %v408_v8 = vld [vmem:[%s1866_s21 + $0x2f8] sm:$0xff]  ;;  %v1562_v12 = vpack.c.bf16 %v390_v63, %v389_v62 }
  0x48   : > { %1579 = vmatpush3.bf16.msra.mxu1 %v1578_v20  ;;  %1549 = vmatprep.subr.bf16.mxu0 %v1548_v21  ;;  %v882_v3 = vld [vmem:[%s2250_s2] sm:$0xff]  ;;  %v422_v6 = vld [vmem:[%s1866_s21 + $0x368] sm:$0xff]  ;;  %v439_v9 = vld [vmem:[%s1866_s21 + $0x3f0] sm:$0xff]  ;;  %v1564_v15 = vpack.c.bf16 %v408_v8, %v407_v7 }
  0x49   : > { %1581 = vmatprep.subr.bf16.mxu1 %v1580_v25  ;;  %536 = vmatprep.mubr.f32.mxu0 %v305_v31  ;;  %v440_v10 = vld [vmem:[%s1866_s21 + $0x3f8] sm:$0xff]  ;;  %v910_v11 = vld [vmem:[%s2251_s3] sm:$0xff]  ;;  %v911_v13 = vld [vmem:[%s2251_s3 + $0x8] sm:$0xff]  ;;  %v1594_v14 = vpack.c.bf16 %v422_v6, %v421_v2 }
  0x4a   : > { %621 = vmatprep.mubr.f32.mxu1 %v307_v33  ;;  %537 = vmatmul.mubr.f32.gmra.mrb[6].mxu0 %v304_v34  ;;  %v391_v16 = vld [vmem:[%s1866_s21 + $0x270] sm:$0xff]  ;;  %v392_v17 = vld [vmem:[%s1866_s21 + $0x278] sm:$0xff]  ;;  %v1596_v19 = vpack.c.bf16 %v440_v10, %v439_v9  ;;  %v441_v21 = vld [vmem:[%s1866_s21 + $0x400] sm:$0xff] }
  0x4b   : > { %1551 = vmatpush3.bf16.msra.mxu0 %v1550_v32  ;;  %622 = vmatmul.mubr.f32.gmra.mrb[6].mxu1 %v306_v35  ;;  %v423_v18 = vld [vmem:[%s1866_s21 + $0x370] sm:$0xff]  ;;  %v424_v20 = vld [vmem:[%s1866_s21 + $0x378] sm:$0xff]  ;;  %v442_v22 = vld [vmem:[%s1866_s21 + $0x408] sm:$0xff]  ;;  %v1566_v24 = vpack.c.bf16 %v392_v17, %v391_v16 }
  0x4c   : > { %1583 = vmatpush3.bf16.msra.mxu1 %v1582_v36  ;;  %1553 = vmatprep.subr.bf16.mxu0 %v1552_v37  ;;  %v884_v23 = vld [vmem:[%s2250_s2 + $0x10] sm:$0xff]  ;;  %v1598_v26 = vpack.c.bf16 %v424_v20, %v423_v18  ;;  %v1600_v27 = vpack.c.bf16 %v442_v22, %v441_v21  ;;  %v444_v29 = vld [vmem:[%s1866_s21 + $0x418] sm:$0xff]  ;;  %v281_v31 = vld [vmem:[%s2249_s1 + $0x20] sm:$0xff] }
  0x4d   : > { %1585 = vmatprep.subr.bf16.mxu1 %v1584_v41  ;;  %691 = vmatprep.mubr.f32.mxu0 %v282_v47  ;;  %v912_v25 = vld [vmem:[%s2251_s3 + $0x10] sm:$0xff]  ;;  %v885_v30 = vld [vmem:[%s2250_s2 + $0x18] sm:$0xff]  ;;  %v445_v36 = vld [vmem:[%s1866_s21 + $0x420] sm:$0xff] }
  0x4e   : > { %776 = vmatprep.mubr.f32.mxu1 %v284_v49  ;;  %888 = vperm.xlu0 %1698, %v882_v3   ;;  %v443_v28 = vld [vmem:[%s1866_s21 + $0x410] sm:$0xff]  ;;  %v913_v32 = vld [vmem:[%s2251_s3 + $0x18] sm:$0xff]  ;;  %v446_v37 = vld [vmem:[%s1866_s21 + $0x428] sm:$0xff] }
  0x4f   : > { %1555 = vmatpush3.bf16.msra.mxu0 %v1554_v48  ;;  %893 = vperm.xlu1 %1699, %v883_v4   ;;  %v283_v33 = vld [vmem:[%s2249_s1 + $0x30] sm:$0xff]  ;;  %v1604_v34 = vpack.c.bf16 %v444_v29, %v443_v28  ;;  %v293_v38 = vld [vmem:[%s2249_s1 + $0x80] sm:$0xff]  ;;  %v290_v40 = vld [vmem:[%s2249_s1 + $0x68] sm:$0xff]  ;;  %v1608_v42 = vpack.c.bf16 %v446_v37, %v445_v36 }
  0x50   : > { %1587 = vmatpush3.bf16.msra.mxu1 %v1586_v50  ;;  %1557 = vmatprep.subr.bf16.mxu0 %v1556_v51  ;;  %v291_v35 = vld [vmem:[%s2249_s1 + $0x70] sm:$0xff]  ;;  %v1061_v39 = vld [vmem:[%s2253_s5] sm:$0xf]  ;;  %v292_v41 = vld [vmem:[%s2249_s1 + $0x78] sm:$0xff] }
  0x51   : > { %1589 = vmatprep.subr.bf16.mxu1 %v1588_v55  ;;  %v300_v43 = vld [vmem:[%s2249_s1 + $0xb8] sm:$0xff]  ;;  %v447_v44 = vld [vmem:[%s1866_s21 + $0x430] sm:$0xff]  ;;  %v302_v46 = vld [vmem:[%s2249_s1 + $0xc8] sm:$0xff] }
  0x52   : > { %916 = vperm.xlu0 %1698, %v910_v11   ;;  %v448_v45 = vld [vmem:[%s1866_s21 + $0x438] sm:$0xff]  ;;  %v299_v47 = vld [vmem:[%s2249_s1 + $0xb0] sm:$0xff]  ;;  %v301_v48 = vld [vmem:[%s2249_s1 + $0xc0] sm:$0xff] }
  0x53   : > { %1559 = vmatpush3.bf16.msra.mxu0 %v1558_v61  ;;  %921 = vperm.xlu1 %1699, %v911_v13   ;;  %v1612_v49 = vpack.c.bf16 %v448_v45, %v447_v44  ;;  %v309_v50 = vld [vmem:[%s2249_s1 + $0x100] sm:$0xff]  ;;  %v450_v52 = vld [vmem:[%s1866_s21 + $0x448] sm:$0xff]  ;;  %v311_v53 = vld [vmem:[%s2249_s1 + $0x110] sm:$0xff] }
  0x54   : > { %1591 = vmatpush3.bf16.msra.mxu1 %v1590_v0  ;;  %1561 = vmatprep.subr.bf16.mxu0 %v1560_v1  ;;  %v449_v51 = vld [vmem:[%s1866_s21 + $0x440] sm:$0xff]  ;;  %v308_v54 = vld [vmem:[%s2249_s1 + $0xf8] sm:$0xff]  ;;  %v310_v55 = vld [vmem:[%s2249_s1 + $0x108] sm:$0xff] }
  0x55   : > { %1593 = vmatprep.subr.bf16.mxu1 %v1592_v5  ;;  %v1616_v56 = vpack.c.bf16 %v450_v52, %v449_v51  ;;  %v451_v57 = vld [vmem:[%s1866_s21 + $0x450] sm:$0xff]  ;;  %v452_v58 = vld [vmem:[%s1866_s21 + $0x458] sm:$0xff]  ;;  %v285_v59 = vld [vmem:[%s2249_s1 + $0x40] sm:$0xff] }
  0x56   : > { %898 = vperm.xlu0 %1698, %v884_v23   ;;  %v1620_v60 = vpack.c.bf16 %v452_v58, %v451_v57  ;;  %v453_v61 = vld [vmem:[%s1866_s21 + $0x460] sm:$0xff]  ;;  %v454_v62 = vld [vmem:[%s1866_s21 + $0x468] sm:$0xff]  ;;  %v455_v0 = vld [vmem:[%s1866_s21 + $0x470] sm:$0xff] }
  0x57   : > { %1563 = vmatpush3.bf16.msra.mxu0 %v1562_v12  ;;  %926 = vperm.xlu1 %1699, %v912_v25   ;;  %v1624_v63 = vpack.c.bf16 %v454_v62, %v453_v61  ;;  %v456_v1 = vld [vmem:[%s1866_s21 + $0x478] sm:$0xff]  ;;  %v294_v3 = vld [vmem:[%s2249_s1 + $0x88] sm:$0xff]  ;;  %v303_v4 = vld [vmem:[%s2249_s1 + $0xd0] sm:$0xff]  ;;  %s1148_s21 = scalar_lea.sflag [#allocation3], %s269_s22 }
  0x58   : > { %1595 = vmatpush3.bf16.msra.mxu1 %v1594_v14  ;;  %1565 = vmatprep.subr.bf16.mxu0 %v1564_v15  ;;  %v1628_v2 = vpack.c.bf16 %v456_v1, %v455_v0  ;;  %v312_v5 = vld [vmem:[%s2249_s1 + $0x118] sm:$0xff]  ;;  %v943_v6 = vld [vmem:[%s2254_s6 + $0x8] sm:$0xff]  ;;  %v942_v8 = vld [vmem:[%s2254_s6] sm:$0xff] }
  0x59   : > { %1597 = vmatprep.subr.bf16.mxu1 %v1596_v19  ;;  %v945_v7 = vld [vmem:[%s2254_s6 + $0x18] sm:$0xff]  ;;  %v944_v10 = vld [vmem:[%s2254_s6 + $0x10] sm:$0xff]  ;;  %v947_v11 = vld [vmem:[%s2254_s6 + $0x28] sm:$0xff] }
  0x5a   : > { %903 = vperm.xlu0 %1698, %v885_v30   ;;  %v1632_v9 = vpack.c.bf16 %v945_v7, %v943_v6  ;;  %v949_v12 = vld [vmem:[%s2254_s6 + $0x38] sm:$0xff]  ;;  %v1634_v13 = vpack.c.bf16 %v944_v10, %v942_v8  ;;  %v946_v15 = vld [vmem:[%s2254_s6 + $0x20] sm:$0xff]  ;;  %v948_v16 = vld [vmem:[%s2254_s6 + $0x30] sm:$0xff]  ;;  %v1765_v30 = vmov 0.0  }
  0x5b   : > { %1567 = vmatpush3.bf16.msra.mxu0 %v1566_v24  ;;  %931 = vperm.xlu1 %1699, %v913_v32   ;;  %v1636_v14 = vpack.c.bf16 %v949_v12, %v947_v11  ;;  %v1638_v17 = vpack.c.bf16 %v948_v16, %v946_v15  ;;  %v951_v18 = vld [vmem:[%s2254_s6 + $0x48] sm:$0xff]  ;;  %v953_v19 = vld [vmem:[%s2254_s6 + $0x58] sm:$0xff]  ;;  %v950_v21 = vld [vmem:[%s2254_s6 + $0x40] sm:$0xff] }
  0x5c   : > { %1599 = vmatpush3.bf16.msra.mxu1 %v1598_v26  ;;  %1601 = vmatprep.subr.bf16.mxu0 %v1600_v27  ;;  %v1640_v20 = vpack.c.bf16 %v953_v19, %v951_v18  ;;  %v952_v22 = vld [vmem:[%s2254_s6 + $0x50] sm:$0xff]  ;;  %v955_v24 = vld [vmem:[%s2254_s6 + $0x68] sm:$0xff]  ;;  %v957_v25 = vld [vmem:[%s2254_s6 + $0x78] sm:$0xff] }
  0x5d   : > { %1633 = vmatprep.subr.bf16.mxu1 %v1632_v9  ;;  %v1642_v23 = vpack.c.bf16 %v952_v22, %v950_v21  ;;  %v1644_v26 = vpack.c.bf16 %v957_v25, %v955_v24  ;;  %v956_v28 = vld [vmem:[%s2254_s6 + $0x70] sm:$0xff] }
  0x5e   : > { %692 = vmatmul.mubr.f32.vlgmr.msra.gmra.mrb[8].mxu0 %v281_v31  ;;  %1064 = vperm.xlu0 %1698, %v1061_v39  }
  0x5f   : > { %1603 = vmatpush3.bf16.msra.mxu0 %v1600_v27  ;;  %777 = vmatmul.mubr.f32.vlgmr.msra.gmra.mrb[8].mxu1 %v283_v33  ;;  %v954_v27 = vld [vmem:[%s2254_s6 + $0x60] sm:$0xff] }
  0x60   : > { %696 = vmatprep.mubr.f32.mxu0 %v291_v35  ;;  %1605 = vmatprep.subr.bf16.mxu0 %v1604_v34  ;;  %v1646_v29 = vpack.c.bf16 %v956_v28, %v954_v27 }
  0x61   : > { %781 = vmatprep.mubr.f32.mxu1 %v293_v38  ;;  %1635 = vmatpush1.bf16.msra.mxu1 %v1634_v13 }
  0x62   : > { %697 = vmatmul.mubr.f32.gmra.mrb[10].mxu0 %v290_v40  ;;  %1637 = vmatprep.subr.bf16.mxu1 %v1636_v14 }
  0x63   : > { %1607 = vmatpush3.bf16.msra.mxu0 %v1604_v34  ;;  %782 = vmatmul.mubr.f32.gmra.mrb[10].mxu1 %v292_v41 }
  0x64   : > { %701 = vmatprep.mubr.f32.mxu0 %v300_v43  ;;  %1609 = vmatprep.subr.bf16.mxu0 %v1608_v42 }
  0x65   : > { %786 = vmatprep.mubr.f32.mxu1 %v302_v46  ;;  %1639 = vmatpush1.bf16.msra.mxu1 %v1638_v17 }
  0x66   : > { %702 = vmatmul.mubr.f32.gmra.mrb[12].mxu0 %v299_v47  ;;  %1641 = vmatprep.subr.bf16.mxu1 %v1640_v20 }
  0x67   : > { %1611 = vmatpush3.bf16.msra.mxu0 %v1608_v42  ;;  %787 = vmatmul.mubr.f32.gmra.mrb[12].mxu1 %v301_v48 }
  0x68   : > { %706 = vmatprep.mubr.f32.mxu0 %v309_v50  ;;  %1613 = vmatprep.subr.bf16.mxu0 %v1612_v49 }
  0x69   : > { %791 = vmatprep.mubr.f32.mxu1 %v311_v53  ;;  %1643 = vmatpush1.bf16.msra.mxu1 %v1642_v23 }
  0x6a   : > { %707 = vmatmul.mubr.f32.gmra.mrb[14].mxu0 %v308_v54  ;;  %1645 = vmatprep.subr.bf16.mxu1 %v1644_v26 }
  0x6b   : > { %1615 = vmatpush3.bf16.msra.mxu0 %v1612_v49  ;;  %792 = vmatmul.mubr.f32.gmra.mrb[14].mxu1 %v310_v55 }
  0x6c   : > { %1617 = vmatprep.subr.bf16.mxu0 %v1616_v56  ;;  %1466 = vmatprep.mubr.f32.mxu0 %v285_v59 }
  0x6d   : > { %1647 = vmatpush1.bf16.msra.mxu1 %v1646_v29  ;;  %1035 = vmatprep.mubr.f32.mxu1 %v1765_v30 }
  0x6f   : > { %1619 = vmatpush3.bf16.msra.mxu0 %v1616_v56 }
  0x70   : > { %1621 = vmatprep.subr.bf16.mxu0 %v1620_v60 }
  0x73   : > { %1623 = vmatpush3.bf16.msra.mxu0 %v1620_v60 }
  0x74   : > { %1625 = vmatprep.subr.bf16.mxu0 %v1624_v63 }
  0x77   : > { %1627 = vmatpush3.bf16.msra.mxu0 %v1624_v63 }
  0x78   : > { %1629 = vmatprep.subr.bf16.mxu0 %v1628_v2 }
  0x7b   : > { %1631 = vmatpush3.bf16.msra.mxu0 %v1628_v2 }
  0x7e   : > { %1467 = vmatmul.mubr.f32.vlgmr.msra.gmra.mrb[16].mxu0 %v294_v3 }
  0x7f   : > { %1469 = vmatprep.mubr.f32.mxu0 %v303_v4 }
  0x82   : > { %1470 = vmatmul.mubr.f32.gmra.mrb[18].mxu0 %v312_v5 }
  0xcd   : > { %v889_v27 = vpop.permute.xlu0 %888 }
  0xce   : > { %v894_v28 = vpop.permute.xlu1 %893 }
  0xd1   : > { %v917_v29 = vpop.permute.xlu0 %916 }
 0x111   : > { %v1270_v31 = vpop.f32.mrb[0].mxu0 }
 0x112   : > { %v1314_v32 = vpop.f32.mrb[0].mxu1  ;;  %v1271_v33 = vpop.f32.mrb[1].mxu0 }
 0x113   : > { %v1272_v34 = vadd.f32 %v1271_v33, %v1270_v31  ;;  %v1315_v35 = vpop.f32.mrb[1].mxu1 }
 0x114   : > { %v1316_v36 = vadd.f32 %v1315_v35, %v1314_v32  ;;  %v922_v35 = vpop.permute.xlu1 %921 }
 0x115   : > { %v1273_v37 = vpop.f32.mrb[2].mxu0 }
 0x116   : > { %v609_v38 = vadd.f32 %v1316_v36, %v1272_v34  ;;  %v1317_v39 = vpop.f32.mrb[2].mxu1  ;;  %v1274_v40 = vpop.f32.mrb[3].mxu0 }
 0x117   : > { %v1275_v41 = vadd.f32 %v1274_v40, %v1273_v37  ;;  %v1318_v42 = vpop.f32.mrb[3].mxu1 }
 0x118   : > { %v1319_v43 = vadd.f32 %v1318_v42, %v1317_v39  ;;  %v899_v39 = vpop.permute.xlu0 %898 }
 0x119   : > { %v1276_v44 = vpop.f32.mrb[4].mxu0 }
 0x11a   : > { %v614_v45 = vadd.f32 %v1319_v43, %v1275_v41  ;;  %v1320_v46 = vpop.f32.mrb[4].mxu1  ;;  %v1277_v47 = vpop.f32.mrb[5].mxu0 }
 0x11b   : > { %v1278_v48 = vadd.f32 %v1277_v47, %v1276_v44  ;;  %v1321_v49 = vpop.f32.mrb[5].mxu1  ;;  %v927_v47 = vpop.permute.xlu1 %926 }
 0x11c   : > { %v1322_v50 = vadd.f32 %v1321_v49, %v1320_v46 }
 0x11d   : > { %v1279_v51 = vpop.f32.mrb[6].mxu0 }
 0x11e   : > { %v619_v52 = vadd.f32 %v1322_v50, %v1278_v48  ;;  %v1323_v53 = vpop.f32.mrb[6].mxu1  ;;  %v1280_v54 = vpop.f32.mrb[7].mxu0 }
 0x11f   : > { %v1281_v55 = vadd.f32 %v1280_v54, %v1279_v51  ;;  %v1324_v56 = vpop.f32.mrb[7].mxu1  ;;  %v904_v48 = vpop.permute.xlu0 %903 }
 0x120   : > { %v1325_v57 = vadd.f32 %v1324_v56, %v1323_v53 }
 0x122   : > { %v624_v58 = vadd.f32 %v1325_v57, %v1281_v55 }
 0x131   : > { %v1358_v59 = vpop.f32.mrb[8].mxu0 }
 0x132   : > { %v1359_v60 = vpop.f32.mrb[9].mxu0  ;;  %v1402_v61 = vpop.f32.mrb[8].mxu1 }
 0x133   : > { %v1360_v62 = vadd.f32 %v1359_v60, %v1358_v59  ;;  %v1403_v63 = vpop.f32.mrb[9].mxu1 }
 0x134   : > { %v1404_v0 = vadd.f32 %v1403_v63, %v1402_v61 }
 0x135   : > { %v694_v1 = vadd.f32 %v1360_v62, %v609_v38  ;;  %v1361_v2 = vpop.f32.mrb[10].mxu0 }
 0x136   : > { %v1362_v3 = vpop.f32.mrb[11].mxu0  ;;  %v1405_v4 = vpop.f32.mrb[10].mxu1 }
 0x137   : > { %v1363_v5 = vadd.f32 %v1362_v3, %v1361_v2  ;;  %v1406_v6 = vpop.f32.mrb[11].mxu1  ;;  %v779_v7 = vadd.f32 %v1404_v0, %v694_v1 }
 0x138   : > { %v1407_v8 = vadd.f32 %v1406_v6, %v1405_v4  ;;  %v1065_v4 = vpop.permute.xlu0 %1064 }
 0x139   : > { %v699_v9 = vadd.f32 %v1363_v5, %v614_v45  ;;  %v1364_v10 = vpop.f32.mrb[12].mxu0 }
 0x13a   : > { %v1365_v11 = vpop.f32.mrb[13].mxu0  ;;  %v1408_v12 = vpop.f32.mrb[12].mxu1 }
 0x13b   : > { %v1366_v13 = vadd.f32 %v1365_v11, %v1364_v10  ;;  %v1409_v14 = vpop.f32.mrb[13].mxu1  ;;  %v784_v15 = vadd.f32 %v1407_v8, %v699_v9 }
 0x13c   : > { %v1410_v16 = vadd.f32 %v1409_v14, %v1408_v12 }
 0x13d   : > { %v704_v17 = vadd.f32 %v1366_v13, %v619_v52  ;;  %v1367_v18 = vpop.f32.mrb[14].mxu0  ;;  %v932_v52 = vpop.permute.xlu1 %931 }
 0x13e   : > { %v1368_v19 = vpop.f32.mrb[15].mxu0  ;;  %v1411_v20 = vpop.f32.mrb[14].mxu1 }
 0x13f   : > { %v1369_v21 = vadd.f32 %v1368_v19, %v1367_v18  ;;  %v1412_v22 = vpop.f32.mrb[15].mxu1  ;;  %v789_v23 = vadd.f32 %v1410_v16, %v704_v17 }
 0x140   : > { %v1413_v24 = vadd.f32 %v1412_v22, %v1411_v20 }
 0x141   : > { %v709_v25 = vadd.f32 %v1369_v21, %v624_v58 }
 0x143   : > { %v794_v26 = vadd.f32 %v1413_v24, %v709_v25 }
 0x151   : > { %v1468_v31 = vpop.f32.mrb[16].mxu0 }
 0x152   : > { %v869_v32 = vadd.f32 %v1468_v31, %v784_v15  ;;  %v863_v33 = vpop.f32.mrb[17].mxu0 }
 0x153   : > { %v864_v34 = vadd.f32 %v863_v33, %v779_v7 }
 0x154   : > { %v907_v36 = vmul.f32 %v894_v28, %v869_v32 }
 0x155   : > { %v906_v37 = vmul.f32 %v889_v27, %v864_v34  ;;  %v1471_v38 = vpop.f32.mrb[18].mxu0 }
 0x156   : > { %v879_v40 = vadd.f32 %v1471_v38, %v794_v26  ;;  %v873_v41 = vpop.f32.mrb[19].mxu0  ;;  %v935_v44 = vadd.f32 %v922_v35, %v907_v36 }
 0x157   : > { %v934_v42 = vadd.f32 %v917_v29, %v906_v37  ;;  %v874_v43 = vadd.f32 %v873_v41, %v789_v23 }
 0x158   : > { %v939_v49 = vmax.f32 %v935_v44, 0.0  ;;  %v909_v50 = vmul.f32 %v904_v48, %v879_v40 }
 0x159   : > { %v938_v45 = vmax.f32 %v934_v42, 0.0  ;;  %v908_v46 = vmul.f32 %v899_v39, %v874_v43 }
 0x15a   : > { %v937_v53 = vadd.f32 %v932_v52, %v909_v50 }
 0x15b   : > { %1227 = vmatmul.mubr.msk.f32.vlgmr.msra.gmra.mrb[16].mxu1 %vm958_vm0, %v938_v45  ;;  %v936_v51 = vadd.f32 %v927_v47, %v908_v46 }
 0x15c   : > { %1041 = vmatprep.mubr.f32.mxu1 %v1765_v30  ;;  %v941_v55 = vmax.f32 %v937_v53, 0.0 }
 0x15d   : > { %v940_v54 = vmax.f32 %v936_v51, 0.0 }
 0x15f   : > { %1228 = vmatmul.mubr.msk.f32.gmra.mrb[18].mxu1 %vm958_vm0, %v939_v49 }
 0x160   : > { %1047 = vmatprep.mubr.f32.mxu1 %v1765_v30 }
 0x163   : > { %1229 = vmatmul.mubr.msk.f32.gmra.mrb[20].mxu1 %vm958_vm0, %v940_v54 }
 0x164   : > { %1053 = vmatprep.mubr.f32.mxu1 %v1765_v30 }
 0x167   : > { %1230 = vmatmul.mubr.msk.f32.gmra.mrb[22].mxu1 %vm958_vm0, %v941_v55 }
 0x168   : > { %1135 = vmatprep.mubr.f32.mxu1 %v1765_v30  ;;  %v1060_v30 = vld [vmem:[%s2252_s4] sm:$0xf] }
 0x22e   : > { %v1037_v56 = vpop.f32.mrb[16].mxu1 }
 0x22f   : > { %v1039_v57 = vpop.f32.mrb[17].mxu1 }
 0x232   : > { %v1043_v58 = vpop.f32.mrb[18].mxu1 }
 0x233   : > { %v1650_v59 = vpack.c.bf16 %v1043_v58, %v1037_v56  ;;  %v1045_v60 = vpop.f32.mrb[19].mxu1 }
 0x234   : > { %v1648_v61 = vpack.c.bf16 %v1045_v60, %v1039_v57 }
 0x236   : > { %v1049_v62 = vpop.f32.mrb[20].mxu1  ;;  %1649 = vmatprep.subr.bf16.mxu1 %v1648_v61 }
 0x237   : > { %v1051_v63 = vpop.f32.mrb[21].mxu1  ;;  %1651 = vmatpush1.bf16.msra.mxu1 %v1650_v59 }
 0x23a   : > { %v1055_v0 = vpop.f32.mrb[22].mxu1 }
 0x23b   : > { %v1654_v1 = vpack.c.bf16 %v1055_v0, %v1049_v62  ;;  %v1057_v2 = vpop.f32.mrb[23].mxu1 }
 0x23c   : > { %v1652_v3 = vpack.c.bf16 %v1057_v2, %v1051_v63 }
 0x23e   : > { %1653 = vmatprep.subr.bf16.mxu1 %v1652_v3 }
 0x23f   : > { %1655 = vmatpush1.bf16.msra.mxu1 %v1654_v1 }
 0x242   : > { %1231 = vmatmul.mubr.msk.f32.vlgmr.msra.gmra.mrb[24].mxu1 %vm1067_vm1, %v1060_v30 }
 0x315   : > { %v1137_v5 = vpop.f32.mrb[24].mxu1 }
 0x316   : > { %v1138_v6 = vadd.f32 %v1137_v5, %v1065_v4  ;;  %v1139_v7 = vpop.f32.mrb[25].mxu1 }
 0x317   : > { %v1140_v8 = vadd.f32 %v1139_v7, %v1065_v4 }
 0x319   : > { %v1144_v9 = vcombine.low %v1138_v6, %v1140_v8 }
 0x31b   : > { %1146 = vst [vmem:[%s271_s8] sm:$0xff] %v1144_v9 }
 0x31c   : > { %1713 = shalt.err (!%p1710_p3)
}
 0x31d   : > { %s1714_s19 = scalar_lea.hbm %s2206_s15, 128  ;;  %s1718_s23 = scalar_lea.hbm %s2255_s7, 256 }
 0x31e   : > { %p1715_p4 = scmp.ne.s32.totalorder %s2206_s15, %s1714_s19  ;;  %p1719_p9 = scmp.lt.u32.totalorder %s2206_s15, %s2255_s7 }
 0x31f   : > { %p1720_p10 = scmp.lt.u32.totalorder %s1718_s23, %s1714_s19  ;;  %p1722_p12 = scmp.lt.u32.totalorder %s1714_s19, %s2206_s15 }
 0x320   : > { %p1716_p7 = pnand %p1715_p4, %p1845_p5 }
 0x321   : > { %p1721_p11 = por %p1720_p10, %p1719_p9 }
 0x322   : > { %p1717_p8 = pneg %p1716_p7 }
 0x323   : > { %p1723_p13 = por %p1722_p12, %p1721_p11 }
 0x325   : > { %p1724_p0 = pnand %p1723_p13, %p1717_p8 }
 0x327   : > { %1727 = shalt.err (!%p1724_p0)
}
 0x328   : > { %1657 = dma.vmem_to_hbm [thread:$0]  (%p1845_p5), %s2208_s9, 128, %s2206_s15, %s1148_s21  }
 0x329 PF: > { %p1663_p1 = scmp.ge.s32.totalorder %s1762_s27, 2  ;;  %s1174_s13 = sand.u32 1, %s1750_s24  }
 0x32a   : > { %s1175_s14 = scalar_lea.sflag [#allocation3], %s1174_s13 }
 0x32b   : > { %p1660_p2 = pnand %p1663_p1, %p1849_p6 }
 0x32d   : > { %1745 = dma.done.wait (!%p1660_p2), %s1175_s14, 128  }
 0x32e   : > { %1747 = vsyncadd (!%p1660_p2), %s1175_s14, 4294967168  ;;  %p17_p3 = scmp.ge.s32.totalorder %s1832_s30, 4   ;;  %s2258_s24 = smov %s1754_s25 }
 0x32f   : > { %s2259_s25 = smov %s1758_s26  ;;  %s2260_s26 = smov %s1843_s10 }
 0x330   : > { %s2261_s27 = smov %s1832_s30  ;;  %19 = sbr.rel (!%p17_p3) target bundleno = 3 (0x3), region = 83 }
 0x337   :  { %1180 = vsyncpa [#allocation3], 1 }
 0x338   :  { %1182 = vsyncpa [#allocation3 + $0x1], 1 }

</bundles_post_ra>
